<compile_context>
chip_gen: v7x
topology: tpu7x:2x2x1
jax: 0.10.0
libtpu: 0.0.40
codegen_flags: <defaults>
</compile_context>

<pallas_src>
import functools

import jax
import jax.numpy as jnp
from jax.experimental import pallas as pl
from jax.experimental.pallas import tpu as pltpu

_LANE = 128
_TARGET_BLOCK_BYTES = 4 * 1024 * 1024   # logits bytes per block (native dtype)
_MAX_TILE_ROWS = 1024                    # keeps f32 temporaries comfortably in VMEM
_VMEM_LIMIT_BYTES = 48 * 1024 * 1024     # <= physical VMEM on v5e/v6e/v7x


def _dc_ce_kernel(x_ref, t_ref, tp_ref, sp_ref, cnt_ref, ce_ref, *,
                  hw, tile_rows, npt, n_full, any_masked, sub):
    """One (batch, half, spatial-tile) grid step.

    x_ref  : (1, C, Tr, 128) logits, native dtype (cast to f32 on load)
    t_ref  : (1, 1, Tr, 128) int32 labels (garbage past the valid region is masked)
    tp_ref / sp_ref / cnt_ref : (1, 1, C, sub, 128) f32 lane/sublane partials
    ce_ref : (1, 1, sub, 128) f32 partial sum of per-voxel cross entropy

    Outputs use a constant block index along the innermost (spatial) grid axis, so
    they stay resident in VMEM across all spatial tiles of a (batch, half) pair.
    """
    h = pl.program_id(1)
    k = pl.program_id(2)

    @pl.when(k == 0)
    def _init():
        tp_ref[...] = jnp.zeros_like(tp_ref)
        sp_ref[...] = jnp.zeros_like(sp_ref)
        cnt_ref[...] = jnp.zeros_like(cnt_ref)
        ce_ref[...] = jnp.zeros_like(ce_ref)

    x = x_ref[0].astype(jnp.float32)          # (C, Tr, 128)
    t = t_ref[0, 0]                           # (Tr, 128) int32
    C, Tr, L = x.shape
    tile_global = h * npt + k                 # global spatial tile index

    def _reduce(a):
        # (..., Tr, 128) -> (..., sub, 128); pure VALU vreg adds when sub == 8
        if sub == 8:
            shp = a.shape[:-2] + (Tr // 8, 8, L)
            return a.reshape(shp).sum(axis=-3)
        return a.sum(axis=-2, keepdims=True)

    def _accumulate(masked):
        # Numerically stable softmax over the small, leading channel axis.
        m = jnp.max(x, axis=0)                                  # (Tr, 128)
        z = x - m[None]                                         # (C, Tr, 128)
        ez = jnp.exp(z)
        s = jnp.sum(ez, axis=0)                                 # (Tr, 128)
        pm = ez * pl.reciprocal(s, approx=True)[None]           # probs (C, Tr, 128)

        if masked:
            # Element-level validity (handles ragged tile rows AND the lane tail);
            # selects (not multiplies) so garbage logits in OOB rows cannot leak NaNs.
            ridx = jax.lax.broadcasted_iota(jnp.int32, (Tr, L), 0)
            lidx = jax.lax.broadcasted_iota(jnp.int32, (Tr, L), 1)
            vox = (tile_global * tile_rows + ridx) * L + lidx
            valid = vox < hw
            t_eff = jnp.where(valid, t, -1)
            sp_c = jnp.where(valid[None], pm, 0.0)
        else:
            t_eff = t
            sp_c = pm

        cls = jax.lax.broadcasted_iota(jnp.int32, (C, Tr, L), 0)
        match = cls == t_eff[None]                              # (C, Tr, 128) bool

        # CE = log(sum exp(z)) - z[target]
        z_t = jnp.sum(jnp.where(match, z, 0.0), axis=0)         # (Tr, 128)
        ce = jnp.log(s) - z_t
        if masked:
            ce = jnp.where(valid, ce, 0.0)

        tp_ref[0, 0] += _reduce(jnp.where(match, pm, 0.0))      # tp
        sp_ref[0, 0] += _reduce(sp_c)                           # sum of probs
        cnt_ref[0, 0] += _reduce(jnp.where(match, 1.0, 0.0))    # class voxel count
        ce_ref[0, 0] += _reduce(ce)                             # CE sum

    if any_masked:
        @pl.when(tile_global < n_full)
        def _fast():
            _accumulate(False)

        @pl.when(tile_global >= n_full)
        def _tail():
            _accumulate(True)
    else:
        _accumulate(False)


def _run_kernel(x4, t4, *, hw, tile_rows, n_tiles, halves, npt, sub):
    B, C, rows, L = x4.shape
    n_full = hw // (tile_rows * L)              # tiles whose every voxel is valid
    any_masked = n_full < halves * npt          # static: does any tile need masking?

    kernel = functools.partial(
        _dc_ce_kernel, hw=hw, tile_rows=tile_rows, npt=npt,
        n_full=n_full, any_masked=any_masked, sub=sub)

    def in_idx(b, h, k):
        # Clamp so redundant tiles (odd tile count split over 2 halves) stay in
        # bounds; their contribution is zeroed by the in-kernel valid mask.
        return (b, 0, jnp.minimum(h * npt + k, n_tiles - 1), 0)

    grid_spec = pltpu.PrefetchScalarGridSpec(
        num_scalar_prefetch=0,
        grid=(B, halves, npt),
        in_specs=[
            pl.BlockSpec((1, C, tile_rows, L), in_idx),
            pl.BlockSpec((1, 1, tile_rows, L), in_idx),
        ],
        out_specs=[
            pl.BlockSpec((1, 1, C, sub, L), lambda b, h, k: (b, h, 0, 0, 0)),
            pl.BlockSpec((1, 1, C, sub, L), lambda b, h, k: (b, h, 0, 0, 0)),
            pl.BlockSpec((1, 1, C, sub, L), lambda b, h, k: (b, h, 0, 0, 0)),
            pl.BlockSpec((1, 1, sub, L), lambda b, h, k: (b, h, 0, 0)),
        ],
    )
    out_shape = (
        jax.ShapeDtypeStruct((B, halves, C, sub, L), jnp.float32),  # tp
        jax.ShapeDtypeStruct((B, halves, C, sub, L), jnp.float32),  # sum_probs
        jax.ShapeDtypeStruct((B, halves, C, sub, L), jnp.float32),  # count
        jax.ShapeDtypeStruct((B, halves, sub, L), jnp.float32),     # ce sum
    )
    return pl.pallas_call(
        kernel,
        out_shape=out_shape,
        grid_spec=grid_spec,
        compiler_params=pltpu.CompilerParams(
            dimension_semantics=("parallel", "parallel", "arbitrary"),
            vmem_limit_bytes=_VMEM_LIMIT_BYTES),
    )(x4, t4)


@functools.partial(jax.jit, static_argnames=(
    "batch_dice", "do_bg", "smooth", "weight_ce", "weight_dice"))
def dc_and_ce_loss(net_output, target,
                   batch_dice=True, do_bg=False, smooth=1e-5,
                   weight_ce=1.0, weight_dice=1.0):
    """Forward pass of DC_and_CE_loss (ignore_label=None).

    net_output: (B, C, *spatial) float logits (NCHW / NCDHW, as in PyTorch)
    target:     (B, 1, *spatial) integer class labels
    """
    # TODO(synk): ignore_label masking is not implemented (module default ignore_label=None).
    B, C = net_output.shape[:2]
    HW = 1
    for d in net_output.shape[2:]:
        HW *= int(d)

    # Keep logits in their native dtype (bf16 stays bf16 in HBM); widen in-kernel only.
    x = net_output.reshape(B, C, HW)
    t = target.reshape(B, HW).astype(jnp.int32)

    rows = -(-HW // _LANE)
    lane_pad = rows * _LANE - HW
    if lane_pad:
        # TODO(synk): only taken when prod(spatial) % 128 != 0 (rare for nnU-Net patch
        # sizes); it costs one extra HBM round-trip of the logits.
        x = jnp.pad(x, ((0, 0), (0, 0), (0, lane_pad)))
        t = jnp.pad(t, ((0, 0), (0, lane_pad)))
    x4 = x.reshape(B, C, rows, _LANE)
    t4 = t.reshape(B, 1, rows, _LANE)

    # Spatial tile size: biggest block within the budget, rounded to the bf16 packing
    # minimum (16 sublanes); tiny volumes use the full extent (always a legal block).
    itemsize = int(jnp.dtype(x4.dtype).itemsize)
    cap = _TARGET_BLOCK_BYTES // max(1, C * _LANE * itemsize)
    cap = max(16, min(_MAX_TILE_ROWS, cap // 16 * 16))
    if rows <= cap:
        tile_rows = rows
        n_tiles = 1
    else:
        tile_rows = cap
        n_tiles = -(-rows // tile_rows)
    halves = 2 if n_tiles >= 2 else 1            # second parallel unit for v7x's 2 TCs
    npt = -(-n_tiles // halves)
    sub = 8 if tile_rows % 8 == 0 else 1

    tp, sp, cnt, ce = _run_kernel(
        x4, t4, hw=HW, tile_rows=tile_rows, n_tiles=n_tiles,
        halves=halves, npt=npt, sub=sub)

    # ---- SoftDiceLoss epilogue (square=False) ----
    tp = tp.sum(axis=(1, 3, 4))                  # (B, C)
    sp = sp.sum(axis=(1, 3, 4))
    cnt = cnt.sum(axis=(1, 3, 4))
    fp = sp - tp
    fn = cnt - tp
    if batch_dice:
        tp = tp.sum(axis=0)                      # (C,)
        fp = fp.sum(axis=0)
        fn = fn.sum(axis=0)
    dc = (2.0 * tp + smooth) / jnp.maximum(2.0 * tp + fp + fn + smooth, 1e-8)
    if not do_bg:
        dc = dc[1:] if batch_dice else dc[:, 1:]
    dc_loss = -jnp.mean(dc)

    # ---- RobustCrossEntropyLoss epilogue (mean over all voxels) ----
    ce_loss = ce.sum() / (B * HW)

    return weight_ce * ce_loss + weight_dice * dc_loss


def _reference_loss(net_output, target, batch_dice=True, do_bg=False,
                    smooth=1e-5, weight_ce=1.0, weight_dice=1.0):
    """Pure-JAX reference mirroring the PyTorch forward, for validation."""
    B, C = net_output.shape[:2]
    x = net_output.astype(jnp.float32)
    t = target.astype(jnp.int32)[:, 0]                               # (B, *spatial)
    probs = jax.nn.softmax(x, axis=1)
    onehot = jax.nn.one_hot(t, C, axis=1, dtype=jnp.float32)         # (B, C, *spatial)
    axes = tuple([0] + list(range(2, x.ndim))) if batch_dice else tuple(range(2, x.ndim))
    tp = jnp.sum(probs * onehot, axis=axes)
    fp = jnp.sum(probs * (1 - onehot), axis=axes)
    fn = jnp.sum((1 - probs) * onehot, axis=axes)
    dc = (2 * tp + smooth) / jnp.maximum(2 * tp + fp + fn + smooth, 1e-8)
    if not do_bg:
        dc = dc[1:] if batch_dice else dc[:, 1:]
    dc_loss = -jnp.mean(dc)
    logsm = jax.nn.log_softmax(x, axis=1)
    ce_map = -jnp.take_along_axis(logsm, t[:, None], axis=1)[:, 0]   # (B, *spatial)
    ce_loss = jnp.mean(ce_map)
    return weight_ce * ce_loss + weight_dice * dc_loss


if __name__ == "__main__":
    # Module config (deterministic, in-script): soft_dice_kwargs = dict(batch_dice=True,
    # smooth=1e-5, do_bg=False), ce_kwargs = {}, weight_ce=1, weight_dice=1,
    # ignore_label=None. No learnable parameters in this module.
    B, C, H, W = 2, 4, 16, 16
    key = jax.random.PRNGKey(0)
    k1, k2 = jax.random.split(key)
    net_output = jax.random.normal(k1, (B, C, H, W), dtype=jnp.float32)
    target = jax.random.randint(k2, (B, 1, H, W), 0, C, dtype=jnp.int32)

    loss = dc_and_ce_loss(net_output, target)
    loss = jax.block_until_ready(loss)

    ref = _reference_loss(net_output, target)
    # pl.reciprocal(approx=True) perturbs the dice partials slightly -> loosened tolerance.
    assert jnp.allclose(loss, ref, rtol=5e-3, atol=5e-3), (loss, ref)

    print("KERNEL_OK")
</pallas_src>

<mosaic_0001>
module attributes {stable_mosaic.version = 11 : i64} {
  func.func @_dc_ce_kernel(%arg0: i32, %arg1: i32, %arg2: i32, %arg3: memref<1x4x2x128xf32, #tpu.memory_space<vmem>>, %arg4: memref<1x1x2x128xi32, #tpu.memory_space<vmem>>, %arg5: memref<1x1x4x1x128xf32, #tpu.memory_space<vmem>>, %arg6: memref<1x1x4x1x128xf32, #tpu.memory_space<vmem>>, %arg7: memref<1x1x4x1x128xf32, #tpu.memory_space<vmem>>, %arg8: memref<1x1x1x128xf32, #tpu.memory_space<vmem>>) attributes {dimension_semantics = [#tpu.dimension_semantics<parallel>, #tpu.dimension_semantics<parallel>, #tpu.dimension_semantics<arbitrary>], iteration_bounds = array<i64: 2, 1, 1>, scalar_prefetch = 0 : i64, scratch_operands = 0 : i64, tpu.core_type = #tpu.core_type<tc>, window_params = [{transform_indices = @transform_0, window_bounds = array<i64: 1, 4, 2, 128>}, {transform_indices = @transform_1, window_bounds = array<i64: 1, 1, 2, 128>}, {transform_indices = @transform_2, window_bounds = array<i64: 1, 1, 4, 1, 128>}, {transform_indices = @transform_3, window_bounds = array<i64: 1, 1, 4, 1, 128>}, {transform_indices = @transform_4, window_bounds = array<i64: 1, 1, 4, 1, 128>}, {transform_indices = @transform_5, window_bounds = array<i64: 1, 1, 1, 128>}]} {
    %c0_i32 = arith.constant 0 : i32
    %0 = arith.cmpi eq, %arg2, %c0_i32 : i32
    %1 = arith.extui %0 : i1 to i32
    %c0_i32_0 = arith.constant 0 : i32
    %2 = arith.cmpi ne, %1, %c0_i32_0 : i32
    scf.if %2 {
      %cst_56 = arith.constant 0.000000e+00 : f32
      %63 = vector.broadcast %cst_56 : f32 to vector<1x1x4x1x128xf32>
      %c0_57 = arith.constant 0 : index
      %c0_58 = arith.constant 0 : index
      %c0_59 = arith.constant 0 : index
      %c0_60 = arith.constant 0 : index
      %c0_61 = arith.constant 0 : index
      %64 = vector.load %arg5[%c0_57, %c0_58, %c0_59, %c0_60, %c0_61] : memref<1x1x4x1x128xf32, #tpu.memory_space<vmem>>, vector<1x1x4x1x128xf32>
      tpu.vector_store %arg5[%c0_57, %c0_58, %c0_59, %c0_60, %c0_61], %63 {strides = array<i32>} : memref<1x1x4x1x128xf32, #tpu.memory_space<vmem>>, vector<1x1x4x1x128xf32>,
      %cst_62 = arith.constant 0.000000e+00 : f32
      %65 = vector.broadcast %cst_62 : f32 to vector<1x1x4x1x128xf32>
      %c0_63 = arith.constant 0 : index
      %c0_64 = arith.constant 0 : index
      %c0_65 = arith.constant 0 : index
      %c0_66 = arith.constant 0 : index
      %c0_67 = arith.constant 0 : index
      %66 = vector.load %arg6[%c0_63, %c0_64, %c0_65, %c0_66, %c0_67] : memref<1x1x4x1x128xf32, #tpu.memory_space<vmem>>, vector<1x1x4x1x128xf32>
      tpu.vector_store %arg6[%c0_63, %c0_64, %c0_65, %c0_66, %c0_67], %65 {strides = array<i32>} : memref<1x1x4x1x128xf32, #tpu.memory_space<vmem>>, vector<1x1x4x1x128xf32>,
      %cst_68 = arith.constant 0.000000e+00 : f32
      %67 = vector.broadcast %cst_68 : f32 to vector<1x1x4x1x128xf32>
      %c0_69 = arith.constant 0 : index
      %c0_70 = arith.constant 0 : index
      %c0_71 = arith.constant 0 : index
      %c0_72 = arith.constant 0 : index
      %c0_73 = arith.constant 0 : index
      %68 = vector.load %arg7[%c0_69, %c0_70, %c0_71, %c0_72, %c0_73] : memref<1x1x4x1x128xf32, #tpu.memory_space<vmem>>, vector<1x1x4x1x128xf32>
      tpu.vector_store %arg7[%c0_69, %c0_70, %c0_71, %c0_72, %c0_73], %67 {strides = array<i32>} : memref<1x1x4x1x128xf32, #tpu.memory_space<vmem>>, vector<1x1x4x1x128xf32>,
      %cst_74 = arith.constant 0.000000e+00 : f32
      %69 = vector.broadcast %cst_74 : f32 to vector<1x1x1x128xf32>
      %c0_75 = arith.constant 0 : index
      %c0_76 = arith.constant 0 : index
      %c0_77 = arith.constant 0 : index
      %c0_78 = arith.constant 0 : index
      %70 = vector.load %arg8[%c0_75, %c0_76, %c0_77, %c0_78] : memref<1x1x1x128xf32, #tpu.memory_space<vmem>>, vector<1x1x1x128xf32>
      tpu.vector_store %arg8[%c0_75, %c0_76, %c0_77, %c0_78], %69 {strides = array<i32>} : memref<1x1x1x128xf32, #tpu.memory_space<vmem>>, vector<1x1x1x128xf32>,
    } else {
    }
    %c0 = arith.constant 0 : index
    %c0_1 = arith.constant 0 : index
    %c0_2 = arith.constant 0 : index
    %c0_3 = arith.constant 0 : index
    %3 = vector.load %arg3[%c0, %c0_1, %c0_2, %c0_3] : memref<1x4x2x128xf32, #tpu.memory_space<vmem>>, vector<1x4x2x128xf32>
    %4 = vector.shape_cast %3 : vector<1x4x2x128xf32> to vector<4x2x128xf32>
    %c0_4 = arith.constant 0 : index
    %c0_5 = arith.constant 0 : index
    %c0_6 = arith.constant 0 : index
    %c0_7 = arith.constant 0 : index
    %5 = vector.load %arg4[%c0_4, %c0_5, %c0_6, %c0_7] : memref<1x1x2x128xi32, #tpu.memory_space<vmem>>, vector<1x1x2x128xi32>
    %6 = vector.shape_cast %5 : vector<1x1x2x128xi32> to vector<2x128xi32>
    %cst = arith.constant dense<0xFF800000> : vector<2x128xf32>
    %7 = vector.multi_reduction <maximumf>, %4, %cst [0] : vector<4x2x128xf32> to vector<2x128xf32>
    %8 = vector.shape_cast %7 : vector<2x128xf32> to vector<1x2x128xf32>
    %9 = vector.broadcast %8 : vector<1x2x128xf32> to vector<4x2x128xf32>
    %10 = arith.subf %4, %9 : vector<4x2x128xf32>
    %11 = math.exp %10 : vector<4x2x128xf32>
    %cst_8 = arith.constant dense<0.000000e+00> : vector<2x128xf32>
    %12 = vector.multi_reduction <add>, %11, %cst_8 [0] : vector<4x2x128xf32> to vector<2x128xf32>
    %13 = tpu.reciprocal %12 {approx = true} : vector<2x128xf32> -> vector<2x128xf32>
    %14 = vector.shape_cast %13 : vector<2x128xf32> to vector<1x2x128xf32>
    %15 = vector.broadcast %14 : vector<1x2x128xf32> to vector<4x2x128xf32>
    %16 = arith.mulf %11, %15 : vector<4x2x128xf32>
    %17 = tpu.iota {dimensions = array<i32: 0>} : vector<4x2x128xi32>
    %18 = vector.shape_cast %6 : vector<2x128xi32> to vector<1x2x128xi32>
    %19 = vector.broadcast %18 : vector<1x2x128xi32> to vector<4x2x128xi32>
    %20 = arith.cmpi eq, %17, %19 : vector<4x2x128xi32>
    %cst_9 = arith.constant 0.000000e+00 : f32
    %21 = vector.broadcast %cst_9 : f32 to vector<4x2x128xf32>
    %22 = arith.select %20, %10, %21 : vector<4x2x128xi1>, vector<4x2x128xf32>
    %cst_10 = arith.constant dense<0.000000e+00> : vector<2x128xf32>
    %23 = vector.multi_reduction <add>, %22, %cst_10 [0] : vector<4x2x128xf32> to vector<2x128xf32>
    %24 = math.log %12 : vector<2x128xf32>
    %25 = arith.subf %24, %23 : vector<2x128xf32>
    %c0_11 = arith.constant 0 : index
    %c0_12 = arith.constant 0 : index
    %c0_13 = arith.constant 0 : index
    %c0_14 = arith.constant 0 : index
    %c0_15 = arith.constant 0 : index
    %26 = vector.load %arg5[%c0_11, %c0_12, %c0_13, %c0_14, %c0_15] : memref<1x1x4x1x128xf32, #tpu.memory_space<vmem>>, vector<1x1x4x1x128xf32>
    %27 = vector.shape_cast %26 : vector<1x1x4x1x128xf32> to vector<4x1x128xf32>
    %cst_16 = arith.constant 0.000000e+00 : f32
    %28 = vector.broadcast %cst_16 : f32 to vector<4x2x128xf32>
    %29 = arith.select %20, %16, %28 : vector<4x2x128xi1>, vector<4x2x128xf32>
    %cst_17 = arith.constant dense<0.000000e+00> : vector<4x128xf32>
    %30 = vector.multi_reduction <add>, %29, %cst_17 [1] : vector<4x2x128xf32> to vector<4x128xf32>
    %31 = vector.shape_cast %30 : vector<4x128xf32> to vector<4x1x128xf32>
    %32 = arith.addf %27, %31 : vector<4x1x128xf32>
    %c0_18 = arith.constant 0 : index
    %c0_19 = arith.constant 0 : index
    %c0_20 = arith.constant 0 : index
    %c0_21 = arith.constant 0 : index
    %c0_22 = arith.constant 0 : index
    %33 = vector.load %arg5[%c0_18, %c0_19, %c0_20, %c0_21, %c0_22] : memref<1x1x4x1x128xf32, #tpu.memory_space<vmem>>, vector<1x1x4x1x128xf32>
    %34 = vector.shape_cast %33 : vector<1x1x4x1x128xf32> to vector<4x1x128xf32>
    %35 = vector.shape_cast %32 : vector<4x1x128xf32> to vector<1x1x4x1x128xf32>
    tpu.vector_store %arg5[%c0_18, %c0_19, %c0_20, %c0_21, %c0_22], %35 {strides = array<i32>} : memref<1x1x4x1x128xf32, #tpu.memory_space<vmem>>, vector<1x1x4x1x128xf32>,
    %c0_23 = arith.constant 0 : index
    %c0_24 = arith.constant 0 : index
    %c0_25 = arith.constant 0 : index
    %c0_26 = arith.constant 0 : index
    %c0_27 = arith.constant 0 : index
    %36 = vector.load %arg6[%c0_23, %c0_24, %c0_25, %c0_26, %c0_27] : memref<1x1x4x1x128xf32, #tpu.memory_space<vmem>>, vector<1x1x4x1x128xf32>
    %37 = vector.shape_cast %36 : vector<1x1x4x1x128xf32> to vector<4x1x128xf32>
    %cst_28 = arith.constant dense<0.000000e+00> : vector<4x128xf32>
    %38 = vector.multi_reduction <add>, %16, %cst_28 [1] : vector<4x2x128xf32> to vector<4x128xf32>
    %39 = vector.shape_cast %38 : vector<4x128xf32> to vector<4x1x128xf32>
    %40 = arith.addf %37, %39 : vector<4x1x128xf32>
    %c0_29 = arith.constant 0 : index
    %c0_30 = arith.constant 0 : index
    %c0_31 = arith.constant 0 : index
    %c0_32 = arith.constant 0 : index
    %c0_33 = arith.constant 0 : index
    %41 = vector.load %arg6[%c0_29, %c0_30, %c0_31, %c0_32, %c0_33] : memref<1x1x4x1x128xf32, #tpu.memory_space<vmem>>, vector<1x1x4x1x128xf32>
    %42 = vector.shape_cast %41 : vector<1x1x4x1x128xf32> to vector<4x1x128xf32>
    %43 = vector.shape_cast %40 : vector<4x1x128xf32> to vector<1x1x4x1x128xf32>
    tpu.vector_store %arg6[%c0_29, %c0_30, %c0_31, %c0_32, %c0_33], %43 {strides = array<i32>} : memref<1x1x4x1x128xf32, #tpu.memory_space<vmem>>, vector<1x1x4x1x128xf32>,
    %c0_34 = arith.constant 0 : index
    %c0_35 = arith.constant 0 : index
    %c0_36 = arith.constant 0 : index
    %c0_37 = arith.constant 0 : index
    %c0_38 = arith.constant 0 : index
    %44 = vector.load %arg7[%c0_34, %c0_35, %c0_36, %c0_37, %c0_38] : memref<1x1x4x1x128xf32, #tpu.memory_space<vmem>>, vector<1x1x4x1x128xf32>
    %45 = vector.shape_cast %44 : vector<1x1x4x1x128xf32> to vector<4x1x128xf32>
    %cst_39 = arith.constant 1.000000e+00 : f32
    %cst_40 = arith.constant 0.000000e+00 : f32
    %46 = vector.broadcast %cst_39 : f32 to vector<4x2x128xf32>
    %47 = vector.broadcast %cst_40 : f32 to vector<4x2x128xf32>
    %48 = arith.select %20, %46, %47 : vector<4x2x128xi1>, vector<4x2x128xf32>
    %cst_41 = arith.constant dense<0.000000e+00> : vector<4x128xf32>
    %49 = vector.multi_reduction <add>, %48, %cst_41 [1] : vector<4x2x128xf32> to vector<4x128xf32>
    %50 = vector.shape_cast %49 : vector<4x128xf32> to vector<4x1x128xf32>
    %51 = arith.addf %45, %50 : vector<4x1x128xf32>
    %c0_42 = arith.constant 0 : index
    %c0_43 = arith.constant 0 : index
    %c0_44 = arith.constant 0 : index
    %c0_45 = arith.constant 0 : index
    %c0_46 = arith.constant 0 : index
    %52 = vector.load %arg7[%c0_42, %c0_43, %c0_44, %c0_45, %c0_46] : memref<1x1x4x1x128xf32, #tpu.memory_space<vmem>>, vector<1x1x4x1x128xf32>
    %53 = vector.shape_cast %52 : vector<1x1x4x1x128xf32> to vector<4x1x128xf32>
    %54 = vector.shape_cast %51 : vector<4x1x128xf32> to vector<1x1x4x1x128xf32>
    tpu.vector_store %arg7[%c0_42, %c0_43, %c0_44, %c0_45, %c0_46], %54 {strides = array<i32>} : memref<1x1x4x1x128xf32, #tpu.memory_space<vmem>>, vector<1x1x4x1x128xf32>,
    %c0_47 = arith.constant 0 : index
    %c0_48 = arith.constant 0 : index
    %c0_49 = arith.constant 0 : index
    %c0_50 = arith.constant 0 : index
    %55 = vector.load %arg8[%c0_47, %c0_48, %c0_49, %c0_50] : memref<1x1x1x128xf32, #tpu.memory_space<vmem>>, vector<1x1x1x128xf32>
    %56 = vector.shape_cast %55 : vector<1x1x1x128xf32> to vector<1x128xf32>
    %cst_51 = arith.constant dense<0.000000e+00> : vector<128xf32>
    %57 = vector.multi_reduction <add>, %25, %cst_51 [0] : vector<2x128xf32> to vector<128xf32>
    %58 = vector.shape_cast %57 : vector<128xf32> to vector<1x128xf32>
    %59 = arith.addf %56, %58 : vector<1x128xf32>
    %c0_52 = arith.constant 0 : index
    %c0_53 = arith.constant 0 : index
    %c0_54 = arith.constant 0 : index
    %c0_55 = arith.constant 0 : index
    %60 = vector.load %arg8[%c0_52, %c0_53, %c0_54, %c0_55] : memref<1x1x1x128xf32, #tpu.memory_space<vmem>>, vector<1x1x1x128xf32>
    %61 = vector.shape_cast %60 : vector<1x1x1x128xf32> to vector<1x128xf32>
    %62 = vector.shape_cast %59 : vector<1x128xf32> to vector<1x1x1x128xf32>
    tpu.vector_store %arg8[%c0_52, %c0_53, %c0_54, %c0_55], %62 {strides = array<i32>} : memref<1x1x1x128xf32, #tpu.memory_space<vmem>>, vector<1x1x1x128xf32>,
    return
  }
  func.func @transform_0(%arg0: i32, %arg1: i32, %arg2: i32) -> (i32, i32, i32, i32) {
    %c1_i32 = arith.constant 1 : i32
    %0 = arith.muli %arg1, %c1_i32 : i32
    %1 = arith.addi %0, %arg2 : i32
    %c0_i32 = arith.constant 0 : i32
    %2 = arith.minsi %1, %c0_i32 : i32
    %c0_i32_0 = arith.constant 0 : i32
    %c0_i32_1 = arith.constant 0 : i32
    %c0_i32_2 = arith.constant 0 : i32
    return %arg0, %c0_i32_0, %2, %c0_i32_1 : i32, i32, i32, i32
  }
  func.func @transform_1(%arg0: i32, %arg1: i32, %arg2: i32) -> (i32, i32, i32, i32) {
    %c1_i32 = arith.constant 1 : i32
    %0 = arith.muli %arg1, %c1_i32 : i32
    %1 = arith.addi %0, %arg2 : i32
    %c0_i32 = arith.constant 0 : i32
    %2 = arith.minsi %1, %c0_i32 : i32
    %c0_i32_0 = arith.constant 0 : i32
    %c0_i32_1 = arith.constant 0 : i32
    %c0_i32_2 = arith.constant 0 : i32
    return %arg0, %c0_i32_0, %2, %c0_i32_1 : i32, i32, i32, i32
  }
  func.func @transform_2(%arg0: i32, %arg1: i32, %arg2: i32) -> (i32, i32, i32, i32, i32) {
    %c0_i32 = arith.constant 0 : i32
    %c0_i32_0 = arith.constant 0 : i32
    %c0_i32_1 = arith.constant 0 : i32
    %c0_i32_2 = arith.constant 0 : i32
    return %arg0, %arg1, %c0_i32, %c0_i32_0, %c0_i32_1 : i32, i32, i32, i32, i32
  }
  func.func @transform_3(%arg0: i32, %arg1: i32, %arg2: i32) -> (i32, i32, i32, i32, i32) {
    %c0_i32 = arith.constant 0 : i32
    %c0_i32_0 = arith.constant 0 : i32
    %c0_i32_1 = arith.constant 0 : i32
    %c0_i32_2 = arith.constant 0 : i32
    return %arg0, %arg1, %c0_i32, %c0_i32_0, %c0_i32_1 : i32, i32, i32, i32, i32
  }
  func.func @transform_4(%arg0: i32, %arg1: i32, %arg2: i32) -> (i32, i32, i32, i32, i32) {
    %c0_i32 = arith.constant 0 : i32
    %c0_i32_0 = arith.constant 0 : i32
    %c0_i32_1 = arith.constant 0 : i32
    %c0_i32_2 = arith.constant 0 : i32
    return %arg0, %arg1, %c0_i32, %c0_i32_0, %c0_i32_1 : i32, i32, i32, i32, i32
  }
  func.func @transform_5(%arg0: i32, %arg1: i32, %arg2: i32) -> (i32, i32, i32, i32) {
    %c0_i32 = arith.constant 0 : i32
    %c0_i32_0 = arith.constant 0 : i32
    %c0_i32_1 = arith.constant 0 : i32
    return %arg0, %arg1, %c0_i32, %c0_i32_0 : i32, i32, i32, i32
  }
}

</mosaic_0001>

<bundles_post_ra>
// kernel: dc_and_ce_loss.1
= control target key start
LH: loop header
LB: loop body
LE: loop exit
PB: predicated region body
PF: predicated region fallthrough
CT: control target
= control target key end

     0   :  { %s936_s18 = smov 0   ;;  %s938_s19 = smov 0   ;;  %s1105_s0 = inlined_call_operand.vmem [shape: f32[2,4,2,128], index: 0, kind: input, shape index: {}]   ;;  %s1106_s1 = inlined_call_operand.vmem [shape: s32[2,1,2,128], index: 1, kind: input, shape index: {}]   ;;  %s1107_s2 = inlined_call_operand.vmem [shape: f32[2,1,4,1,128], index: 2, kind: output, shape index: {0}]   ;;  %s1108_s3 = inlined_call_operand.vmem [shape: f32[2,1,4,1,128], index: 3, kind: output, shape index: {1}]   ;;  %s1109_s4 = inlined_call_operand.vmem [shape: f32[2,1,4,1,128], index: 4, kind: output, shape index: {2}]   ;;  %s1110_s5 = inlined_call_operand.vmem [shape: f32[2,1,1,128], index: 5, kind: output, shape index: {3}]  }
   0x1   :  { %s940_s20 = smov 0  }
   0x2 LB: > { %s35_s21 = sadd.s32 1, %s899_s19  ;;  %p834_p0 = scmp.ge.s32.totalorder %s903_s20, 1  ;;  %s903_s20 = sphi %s940_s20, %s16_s20   ;;  %s899_s19 = sphi %s938_s19, %s1112_s19   ;;  %s895_s18 = sphi %s936_s18, %s1111_s18  }
   0x3   : > { %p37_p1 = scmp.ge.s32.totalorder %s35_s21, 2  ;;  %p264_p2 = scmp.lt.s32.totalorder %s903_s20, 3 }
   0x5   : > { %s1114_s21 = smov (%p37_p1, %s35_s21), 0  ;;  %p265_p3 = pnand %p834_p0, %p264_p2 }
   0x6   : > { %p336_p4 = scmp.lt.s32.totalorder (!%p265_p3), %s895_s18, 1  ;;  %v905_v0 = vmov (!%p265_p3), 0.0   ;;  %vm412_vm0 = vcmask (!%p265_p3), 1041408  }
   0x7   : > { %268 = sbr.rel (%p265_p3) target bundleno = 98 (0x62), region = 28 }
   0xe   : > { %s1116_s18 = smov (!%p336_p4, %s895_s18), 1 }
   0xf   : > { %s838_s22 = sshll.u32 %s1116_s18, 2  ;;  %s957_s25 = scalar_lea.vmem %s1110_s5, %s1116_s18 }
  0x10   : > { %s962_s28 = scalar_lea.vmem %s1107_s2, %s838_s22  ;;  %s967_s6 = scalar_lea.vmem %s1108_s3, %s838_s22  ;;  %406 = vst [vmem:[%s957_s25] sm:$0x1] %v905_v0 }
  0x11   : > { %394 = vst [vmem:[%s962_s28] sm:$0x1] %v905_v0  ;;  %395 = vst [vmem:[%s962_s28 + $0x1] sm:$0x1] %v905_v0  ;;  %s981_s9 = scalar_lea.vmem %s1109_s4, %s838_s22  ;;  %s843_s10 = sshll.u32 %s1116_s18, 3 }
  0x12   : > { %396 = vst [vmem:[%s962_s28 + $0x2] sm:$0x1] %v905_v0  ;;  %397 = vst [vmem:[%s962_s28 + $0x3] sm:$0x1] %v905_v0  ;;  %s343_s13 = scalar_lea.vmem %s1105_s0, %s843_s10  ;;  %s837_s14 = sshll.u32 %s1116_s18, 1 }
  0x13   : > { %398 = vst [vmem:[%s967_s6] sm:$0x1] %v905_v0  ;;  %399 = vst [vmem:[%s967_s6 + $0x1] sm:$0x1] %v905_v0  ;;  %s356_s17 = scalar_lea.vmem %s1106_s1, %s837_s14  ;;  %v407_v1 = vld [vmem:[%s343_s13] sm:$0x3] }
  0x14   : > { %400 = vst [vmem:[%s967_s6 + $0x2] sm:$0x1] %v905_v0  ;;  %401 = vst [vmem:[%s967_s6 + $0x3] sm:$0x1] %v905_v0  ;;  %v408_v2 = vld [vmem:[%s343_s13 + $0x2] sm:$0x3] }
  0x15   : > { %402 = vst [vmem:[%s981_s9] sm:$0x1] %v905_v0  ;;  %403 = vst [vmem:[%s981_s9 + $0x1] sm:$0x1] %v905_v0  ;;  %v409_v3 = vld [vmem:[%s343_s13 + $0x4] sm:$0x3]  ;;  %v413_v6 = vsel %vm412_vm0, %v407_v1, -inf }
  0x16   : > { %404 = vst [vmem:[%s981_s9 + $0x2] sm:$0x1] %v905_v0  ;;  %405 = vst [vmem:[%s981_s9 + $0x3] sm:$0x1] %v905_v0  ;;  %v410_v4 = vld [vmem:[%s343_s13 + $0x6] sm:$0x3] }
  0x17   : > { %v993_v5 = vld [vmem:[%s356_s17] sm:$0x3]  ;;  %v414_v7 = vsel %vm412_vm0, %v408_v2, -inf  ;;  %v415_v8 = vsel %vm412_vm0, %v409_v3, -inf  ;;  %v416_v9 = vsel %vm412_vm0, %v410_v4, -inf }
  0x18   : > { %v417_v10 = vmax.f32 %v413_v6, %v414_v7  ;;  %v418_v11 = vmax.f32 %v415_v8, %v416_v9  ;;  %vm444_vm1 = vcmp.eq.s32.totalorder %v993_v5, 0  ;;  %vm445_vm2 = vcmp.eq.s32.totalorder %v993_v5, 1 }
  0x19   : > { %v550_v13 = vsel %vm444_vm1, 1.0, %v905_v0  ;;  %v551_v14 = vsel %vm445_vm2, 1.0, %v905_v0  ;;  %vm446_vm3 = vcmp.eq.s32.totalorder %v993_v5, 2  ;;  %vm447_vm4 = vcmp.eq.s32.totalorder %v993_v5, 3 }
  0x1a   : > { %v419_v12 = vmax.f32 %v417_v10, %v418_v11  ;;  %v554_v19 = vsel %vm412_vm0, %v550_v13, 0.0  ;;  %v561_v24 = vsel %vm412_vm0, %v551_v14, 0.0  ;;  %v552_v25 = vsel %vm446_vm3, 1.0, %v905_v0 }
  0x1b   : > { %v553_v26 = vsel %vm447_vm4, 1.0, %v905_v0  ;;  %v555_v27 = vrot.slane %v554_v19, 4  ;;  %v562_v28 = vrot.slane %v561_v24, 4  ;;  %v568_v29 = vsel %vm412_vm0, %v552_v25, 0.0 }
  0x1c   : > { %v1005_v15 = vsub.f32 %v407_v1, %v419_v12  ;;  %v1007_v16 = vsub.f32 %v408_v2, %v419_v12  ;;  %v1009_v17 = vsub.f32 %v409_v3, %v419_v12  ;;  %v1011_v18 = vsub.f32 %v410_v4, %v419_v12  ;;  %v546_v47 = vld [vmem:[%s981_s9] sm:$0x1]  ;;  %v547_v52 = vld [vmem:[%s981_s9 + $0x1] sm:$0x1] }
  0x1d   : > { %v575_v30 = vsel %vm412_vm0, %v553_v26, 0.0  ;;  %v556_v31 = vadd.f32 %v555_v27, %v554_v19  ;;  %v569_v32 = vrot.slane %v568_v29, 4  ;;  %v563_v34 = vadd.f32 %v562_v28, %v561_v24  ;;  %v548_v58 = vld [vmem:[%s981_s9 + $0x2] sm:$0x1]  ;;  %v549_v0 = vld [vmem:[%s981_s9 + $0x3] sm:$0x1] }
  0x1e   : > { %v424_v20 = vmul.f32 1.442695, %v1005_v15  ;;  %v426_v21 = vmul.f32 1.442695, %v1007_v16  ;;  %v428_v22 = vmul.f32 1.442695, %v1009_v17 }
  0x1f   : > { %v430_v23 = vmul.f32 1.442695, %v1011_v18  ;;  %v576_v33 = vrot.slane %v575_v30, 4  ;;  %v557_v35 = vrot.slane %v556_v31, 2  ;;  %v570_v36 = vadd.f32 %v569_v32, %v568_v29 }
  0x20   : > { %869 = vpow2.f32 %v424_v20  ;;  %v564_v38 = vrot.slane %v563_v34, 2  ;;  %v448_v9 = vsel %vm444_vm1, %v1005_v15, 0.0  ;;  %v449_v10 = vsel %vm445_vm2, %v1007_v16, 0.0 }
  0x21   : > { %871 = vpow2.f32 %v426_v21  ;;  %v577_v37 = vadd.f32 %v576_v33, %v575_v30  ;;  %v558_v39 = vadd.f32 %v557_v35, %v556_v31  ;;  %v571_v40 = vrot.slane %v570_v36, 2 }
  0x22   : > { %873 = vpow2.f32 %v428_v22  ;;  %v565_v42 = vadd.f32 %v564_v38, %v563_v34  ;;  %v452_v11 = vsel %vm412_vm0, %v448_v9, 0.0  ;;  %v453_v12 = vsel %vm412_vm0, %v449_v10, 0.0  ;;  %v464_v9 = vld [vmem:[%s962_s28 + $0x2] sm:$0x1]  ;;  %v465_v10 = vld [vmem:[%s962_s28 + $0x3] sm:$0x1] }
  0x23   : > { %875 = vpow2.f32 %v430_v23  ;;  %v578_v41 = vrot.slane %v577_v37, 2  ;;  %v559_v43 = vrot.slane %v558_v39, 1  ;;  %v572_v44 = vadd.f32 %v571_v40, %v570_v36 }
  0x24   : > { %v566_v48 = vrot.slane %v565_v42, 1  ;;  %v450_v13 = vsel %vm446_vm3, %v1009_v17, 0.0  ;;  %v454_v14 = vadd.f32 %v453_v12, %v452_v11  ;;  %v451_v15 = vsel %vm447_vm4, %v1011_v18, 0.0 }
  0x25   : > { %v579_v45 = vadd.f32 %v578_v41, %v577_v37  ;;  %v560_v51 = vadd.f32 %v559_v43, %v558_v39  ;;  %v573_v53 = vrot.slane %v572_v44, 1  ;;  %v455_v19 = vsel %vm412_vm0, %v450_v13, 0.0 }
  0x26   : > { %v567_v57 = vadd.f32 %v566_v48, %v565_v42  ;;  %v456_v16 = vadd.f32 %v455_v19, %v454_v14  ;;  %v457_v20 = vsel %vm412_vm0, %v451_v15, 0.0 }
  0x27   : > { %v580_v54 = vrot.slane %v579_v45, 1  ;;  %v582_v62 = vadd.f32 %v560_v51, %v546_v47  ;;  %v574_v63 = vadd.f32 %v573_v53, %v572_v44 }
  0x28   : > { %v583_v2 = vadd.f32 %v567_v57, %v547_v52  ;;  %v1055_v27 = vadd.f32 %v457_v20, %v456_v16 }
  0x29   : > { %v581_v3 = vadd.f32 %v580_v54, %v579_v45  ;;  %586 = vst [vmem:[%s981_s9] sm:$0x1] %v582_v62  ;;  %v584_v6 = vadd.f32 %v574_v63, %v548_v58 }
  0x2a   : > { %v870_v46 = vpop.eup %869  ;;  %587 = vst [vmem:[%s981_s9 + $0x1] sm:$0x1] %v583_v2  ;;  %v462_v2 = vld [vmem:[%s962_s28] sm:$0x1] }
  0x2b   : > { %v872_v49 = vpop.eup %871  ;;  %v432_v50 = vsel %vm412_vm0, %v870_v46, 0.0  ;;  %v585_v7 = vadd.f32 %v581_v3, %v549_v0  ;;  %588 = vst [vmem:[%s981_s9 + $0x2] sm:$0x1] %v584_v6 }
  0x2c   : > { %v874_v55 = vpop.eup %873  ;;  %v433_v56 = vsel %vm412_vm0, %v872_v49, 0.0 }
  0x2d   : > { %v876_v59 = vpop.eup %875  ;;  %v434_v60 = vadd.f32 %v433_v56, %v432_v50  ;;  %v435_v61 = vsel %vm412_vm0, %v874_v55, 0.0  ;;  %589 = vst [vmem:[%s981_s9 + $0x3] sm:$0x1] %v585_v7 }
  0x2e   : > { %v437_v1 = vsel %vm412_vm0, %v876_v59, 0.0 }
  0x2f   : > { %v436_v4 = vadd.f32 %v435_v61, %v434_v60 }
  0x31   : > { %v438_v8 = vadd.f32 %v437_v1, %v436_v4 }
  0x33   : > { %877 = vrcp.f32 %v438_v8 }
  0x34   : > { %879 = vlog2.f32 %v438_v8  ;;  %v463_v8 = vld [vmem:[%s962_s28 + $0x1] sm:$0x1] }
  0x3d   : > { %v878_v21 = vpop.eup %877 }
  0x3e   : > { %v880_v22 = vpop.eup %879  ;;  %v440_v23 = vmul.f32 %v878_v21, %v870_v46  ;;  %v441_v24 = vmul.f32 %v878_v21, %v872_v49  ;;  %v442_v25 = vmul.f32 %v878_v21, %v874_v55  ;;  %v443_v26 = vmul.f32 %v878_v21, %v876_v59  ;;  %v506_v21 = vld [vmem:[%s967_s6] sm:$0x1] }
  0x3f   : > { %v1057_v28 = vmul.f32 0.6931472, %v880_v22 }
  0x40   : > { %v466_v17 = vsel %vm444_vm1, %v440_v23, 0.0  ;;  %v467_v29 = vsel %vm445_vm2, %v441_v24, 0.0  ;;  %v468_v18 = vsel %vm446_vm3, %v442_v25, 0.0  ;;  %v469_v30 = vsel %vm447_vm4, %v443_v26, 0.0 }
  0x41   : > { %v470_v31 = vsel %vm412_vm0, %v466_v17, 0.0  ;;  %v477_v32 = vsel %vm412_vm0, %v467_v29, 0.0  ;;  %v484_v33 = vsel %vm412_vm0, %v468_v18, 0.0  ;;  %v491_v34 = vsel %vm412_vm0, %v469_v30, 0.0  ;;  %v507_v30 = vld [vmem:[%s967_s6 + $0x1] sm:$0x1] }
  0x42   : > { %v471_v35 = vrot.slane %v470_v31, 4  ;;  %v478_v36 = vrot.slane %v477_v32, 4  ;;  %v485_v37 = vrot.slane %v484_v33, 4  ;;  %v492_v38 = vrot.slane %v491_v34, 4 }
  0x43   : > { %v510_v39 = vsel %vm412_vm0, %v440_v23, 0.0  ;;  %v517_v40 = vsel %vm412_vm0, %v441_v24, 0.0  ;;  %v524_v41 = vsel %vm412_vm0, %v442_v25, 0.0  ;;  %v531_v5 = vsel %vm412_vm0, %v443_v26, 0.0 }
  0x44   : > { %v472_v42 = vadd.f32 %v471_v35, %v470_v31  ;;  %v479_v43 = vadd.f32 %v478_v36, %v477_v32  ;;  %v486_v44 = vadd.f32 %v485_v37, %v484_v33  ;;  %v493_v45 = vadd.f32 %v492_v38, %v491_v34  ;;  %v508_v31 = vld [vmem:[%s967_s6 + $0x2] sm:$0x1]  ;;  %v509_v32 = vld [vmem:[%s967_s6 + $0x3] sm:$0x1] }
  0x45   : > { %v511_v46 = vrot.slane %v510_v39, 4  ;;  %v518_v47 = vrot.slane %v517_v40, 4  ;;  %v525_v48 = vrot.slane %v524_v41, 4  ;;  %v532_v49 = vrot.slane %v531_v5, 4 }
  0x46   : > { %v473_v50 = vrot.slane %v472_v42, 2  ;;  %v480_v51 = vrot.slane %v479_v43, 2  ;;  %v487_v52 = vrot.slane %v486_v44, 2  ;;  %v494_v53 = vrot.slane %v493_v45, 2 }
  0x47   : > { %v512_v54 = vadd.f32 %v511_v46, %v510_v39  ;;  %v519_v55 = vadd.f32 %v518_v47, %v517_v40  ;;  %v526_v56 = vadd.f32 %v525_v48, %v524_v41  ;;  %v533_v57 = vadd.f32 %v532_v49, %v531_v5  ;;  %v590_v47 = vld [vmem:[%s957_s25] sm:$0x1] }
  0x48   : > { %v474_v58 = vadd.f32 %v473_v50, %v472_v42  ;;  %v481_v59 = vadd.f32 %v480_v51, %v479_v43  ;;  %v488_v60 = vadd.f32 %v487_v52, %v486_v44  ;;  %v495_v61 = vadd.f32 %v494_v53, %v493_v45 }
  0x49   : > { %v513_v62 = vrot.slane %v512_v54, 2  ;;  %v520_v63 = vrot.slane %v519_v55, 2  ;;  %v527_v0 = vrot.slane %v526_v56, 2  ;;  %v534_v1 = vrot.slane %v533_v57, 2 }
  0x4a   : > { %v475_v3 = vrot.slane %v474_v58, 1  ;;  %v482_v4 = vrot.slane %v481_v59, 1  ;;  %v489_v6 = vrot.slane %v488_v60, 1  ;;  %v496_v7 = vrot.slane %v495_v61, 1 }
  0x4b   : > { %v514_v11 = vadd.f32 %v513_v62, %v512_v54  ;;  %v521_v12 = vadd.f32 %v520_v63, %v519_v55  ;;  %v528_v13 = vadd.f32 %v527_v0, %v526_v56  ;;  %v535_v14 = vadd.f32 %v534_v1, %v533_v57 }
  0x4c   : > { %v476_v19 = vadd.f32 %v475_v3, %v474_v58  ;;  %v483_v15 = vadd.f32 %v482_v4, %v481_v59  ;;  %v490_v16 = vadd.f32 %v489_v6, %v488_v60  ;;  %v497_v20 = vadd.f32 %v496_v7, %v495_v61 }
  0x4d   : > { %v515_v22 = vrot.slane %v514_v11, 1  ;;  %v522_v23 = vrot.slane %v521_v12, 1  ;;  %v529_v24 = vrot.slane %v528_v13, 1  ;;  %v536_v25 = vrot.slane %v535_v14, 1 }
  0x4e   : > { %v498_v26 = vadd.f32 %v476_v19, %v462_v2  ;;  %v499_v17 = vadd.f32 %v483_v15, %v463_v8  ;;  %v500_v29 = vadd.f32 %v490_v16, %v464_v9  ;;  %v501_v18 = vadd.f32 %v497_v20, %v465_v10 }
  0x4f   : > { %v516_v33 = vadd.f32 %v515_v22, %v514_v11  ;;  %v523_v34 = vadd.f32 %v522_v23, %v521_v12  ;;  %v530_v35 = vadd.f32 %v529_v24, %v528_v13  ;;  %v537_v36 = vadd.f32 %v536_v25, %v535_v14 }
  0x50   : > { %502 = vst [vmem:[%s962_s28] sm:$0x1] %v498_v26  ;;  %503 = vst [vmem:[%s962_s28 + $0x1] sm:$0x1] %v499_v17  ;;  %v461_v37 = vsub.f32 %v1057_v28, %v1055_v27 }
  0x51   : > { %504 = vst [vmem:[%s962_s28 + $0x2] sm:$0x1] %v500_v29  ;;  %505 = vst [vmem:[%s962_s28 + $0x3] sm:$0x1] %v501_v18  ;;  %v538_v38 = vadd.f32 %v516_v33, %v506_v21  ;;  %v539_v39 = vadd.f32 %v523_v34, %v507_v30  ;;  %v540_v40 = vadd.f32 %v530_v35, %v508_v31 }
  0x52   : > { %v541_v41 = vadd.f32 %v537_v36, %v509_v32  ;;  %v591_v5 = vsel %vm412_vm0, %v461_v37, 0.0 }
  0x53   : > { %542 = vst [vmem:[%s967_s6] sm:$0x1] %v538_v38  ;;  %543 = vst [vmem:[%s967_s6 + $0x1] sm:$0x1] %v539_v39  ;;  %v592_v42 = vrot.slane %v591_v5, 4 }
  0x54   : > { %544 = vst [vmem:[%s967_s6 + $0x2] sm:$0x1] %v540_v40  ;;  %545 = vst [vmem:[%s967_s6 + $0x3] sm:$0x1] %v541_v41 }
  0x55   : > { %v593_v43 = vadd.f32 %v592_v42, %v591_v5 }
  0x57   : > { %v594_v44 = vrot.slane %v593_v43, 2 }
  0x59   : > { %v595_v45 = vadd.f32 %v594_v44, %v593_v43 }
  0x5b   : > { %v596_v46 = vrot.slane %v595_v45, 1 }
  0x5d   : > { %v597_v48 = vadd.f32 %v596_v46, %v595_v45 }
  0x5f   : > { %v598_v49 = vadd.f32 %v597_v48, %v590_v47 }
  0x61   : > { %599 = vst [vmem:[%s957_s25] sm:$0x1] %v598_v49 }
  0x62 PF: > { %s16_s20 = sadd.s32 1, %s903_s20   ;;  %s1111_s18 = smov %s899_s19 }
  0x63   : > { %p13_p5 = scmp.ge.s32.totalorder %s16_s20, 4   ;;  %s1112_s19 = smov %s1114_s21 }
  0x65   :  { %15 = sbr.rel (!%p13_p5) target bundleno = 2 (0x2), region = 101 }

</bundles_post_ra>
